<compile_context>
chip_gen: v6e
topology: v6e:2x2x1
jax: 0.10.0
libtpu: 0.0.40
codegen_flags: <defaults>
</compile_context>

<pallas_src>
import functools

import jax
import jax.numpy as jnp
from jax.experimental import pallas as pl
from jax.experimental.pallas import tpu as pltpu


def _round_up(x, m):
    return (x + m - 1) // m * m


def _kl_div_kernel(t_ref, pred_ref, tgt_ref, out_ref, *, n_rows, block_rows):
    # t_ref:    SMEM f32[1]                 -- clamped temperature T_s
    # pred_ref: VMEM [block_rows, C]        -- logits tile (any float dtype)
    # tgt_ref:  VMEM [block_rows, C]        -- target-probability tile
    # out_ref:  VMEM f32[1, 8, C]           -- lane-dense per-block partial sum
    T = t_ref[0]
    pid = pl.program_id(0)

    # Temperature-scaled log-softmax along the class (lane) axis, in f32.
    x = pred_ref[...].astype(jnp.float32) * T
    m = jnp.max(x, axis=-1, keepdims=True)
    z = x - m
    lse = jnp.log(jnp.sum(jnp.exp(z), axis=-1, keepdims=True))
    logp = z - lse

    t = tgt_ref[...].astype(jnp.float32)

    # Validity mask: target > 0 (KLDiv convention) AND row inside the real batch
    # (tail tile may read garbage rows past N -- mask them to zero contribution).
    row_ids = pid * block_rows + jax.lax.broadcasted_iota(jnp.int32, t.shape, 0)
    valid = (t > 0.0) & (row_ids < n_rows)

    safe_t = jnp.where(valid, t, 1.0)
    pointwise = jnp.where(valid, t * (jnp.log(safe_t) - logp), 0.0)

    # Fold the (block_rows, C) tile into one vreg-shaped (8, C) partial using only
    # VPU adds; the single cross-lane reduction happens once in the wrapper.
    c = pointwise.shape[-1]
    partial = pointwise.reshape(block_rows // 8, 8, c).sum(axis=0)
    out_ref[...] = partial[None, :, :]


def kl_div_loss(pred, target_prob, theta, *, block_rows=512):
    """pred: (N, C) logits, target_prob: (N, C) probabilities, theta: scalar param (init 3.9)."""
    n, c = pred.shape

    # Parameter transform (glue) in plain JAX; hot path runs in the Pallas kernel.
    temp = jnp.clip(jnp.exp(theta), 1.0, 100.0).astype(jnp.float32).reshape(1)

    # Row tile: multiple of 8 (sublane), no larger than the (rounded-up) batch.
    br = min(block_rows, _round_up(n, 8))
    br = max(8, (br // 8) * 8)
    nb = pl.cdiv(n, br)

    partials = pl.pallas_call(
        functools.partial(_kl_div_kernel, n_rows=n, block_rows=br),
        out_shape=jax.ShapeDtypeStruct((nb, 8, c), jnp.float32),
        grid=(nb,),
        in_specs=[
            pl.BlockSpec(memory_space=pltpu.MemorySpace.SMEM),       # temperature scalar
            pl.BlockSpec((br, c), lambda i: (i, 0)),                  # pred tile
            pl.BlockSpec((br, c), lambda i: (i, 0)),                  # target tile
        ],
        out_specs=pl.BlockSpec((1, 8, c), lambda i: (i, 0, 0)),       # lane-dense partials
        compiler_params=pltpu.CompilerParams(
            dimension_semantics=("parallel",),                        # megacore-shardable on v7x
        ),
    )(temp, pred, target_prob)

    # Tiny final reduction + 'batchmean' normalization (done exactly once).
    return jnp.sum(partials) / jnp.float32(n)


def _reference(pred, target_prob, theta):
    T = jnp.clip(jnp.exp(theta), 1.0, 100.0)
    logp = jax.nn.log_softmax(pred.astype(jnp.float32) * T, axis=-1)
    t = target_prob.astype(jnp.float32)
    safe_t = jnp.where(t > 0.0, t, 1.0)
    pw = jnp.where(t > 0.0, t * (jnp.log(safe_t) - logp), 0.0)
    return jnp.sum(pw) / pred.shape[0]


if __name__ == "__main__":
    # Deterministic parameter init (matches nn.Parameter(torch.tensor(3.9))).
    theta = jnp.float32(3.9)

    key = jax.random.PRNGKey(0)
    k1, k2, k3, k4 = jax.random.split(key, 4)

    # Case 1: batch not a multiple of the row tile (exercises padded-tail masking).
    pred_a = jax.random.normal(k1, (24, 128), dtype=jnp.float32)
    tgt_a = jax.nn.softmax(jax.random.normal(k2, (24, 128), dtype=jnp.float32), axis=-1)
    loss_a = kl_div_loss(pred_a, tgt_a, theta, block_rows=16)
    jax.block_until_ready(loss_a)
    ref_a = _reference(pred_a, tgt_a, theta)
    assert jnp.allclose(loss_a, ref_a, rtol=1e-5, atol=1e-5), (loss_a, ref_a)

    # Case 2: small exact-fit batch with default tiling.
    pred_b = jax.random.normal(k3, (8, 128), dtype=jnp.float32)
    tgt_b = jax.nn.softmax(jax.random.normal(k4, (8, 128), dtype=jnp.float32), axis=-1)
    loss_b = kl_div_loss(pred_b, tgt_b, theta)
    jax.block_until_ready(loss_b)
    ref_b = _reference(pred_b, tgt_b, theta)
    assert jnp.allclose(loss_b, ref_b, rtol=1e-5, atol=1e-5), (loss_b, ref_b)

    print("KERNEL_OK")
</pallas_src>

<mosaic_0001>
module attributes {stable_mosaic.version = 11 : i64} {
  func.func @_kl_div_kernel(%arg0: i32, %arg1: memref<1xf32, #tpu.memory_space<smem>>, %arg2: memref<16x128xf32, #tpu.memory_space<vmem>>, %arg3: memref<16x128xf32, #tpu.memory_space<vmem>>, %arg4: memref<1x8x128xf32, #tpu.memory_space<vmem>>) attributes {dimension_semantics = [#tpu.dimension_semantics<parallel>], iteration_bounds = array<i64: 2>, scalar_prefetch = 0 : i64, scratch_operands = 0 : i64, tpu.core_type = #tpu.core_type<tc>, window_params = [{transform_indices = @transform_0, window_bounds = array<i64: 1>}, {transform_indices = @transform_1, window_bounds = array<i64: 16, 128>}, {transform_indices = @transform_2, window_bounds = array<i64: 16, 128>}, {transform_indices = @transform_3, window_bounds = array<i64: 1, 8, 128>}]} {
    %c0 = arith.constant 0 : index
    %0 = memref.load %arg1[%c0] : memref<1xf32, #tpu.memory_space<smem>>
    %c0_0 = arith.constant 0 : index
    %c0_1 = arith.constant 0 : index
    %1 = vector.load %arg2[%c0_0, %c0_1] : memref<16x128xf32, #tpu.memory_space<vmem>>, vector<16x128xf32>
    %2 = vector.broadcast %0 : f32 to vector<16x128xf32>
    %3 = arith.mulf %1, %2 : vector<16x128xf32>
    %cst = arith.constant dense<0xFF800000> : vector<16xf32>
    %4 = vector.multi_reduction <maximumf>, %3, %cst [1] : vector<16x128xf32> to vector<16xf32>
    %5 = vector.shape_cast %4 : vector<16xf32> to vector<16x1xf32>
    %6 = vector.broadcast %5 : vector<16x1xf32> to vector<16x128xf32>
    %7 = arith.subf %3, %6 : vector<16x128xf32>
    %8 = math.exp %7 : vector<16x128xf32>
    %cst_2 = arith.constant dense<0.000000e+00> : vector<16xf32>
    %9 = vector.multi_reduction <add>, %8, %cst_2 [1] : vector<16x128xf32> to vector<16xf32>
    %10 = vector.shape_cast %9 : vector<16xf32> to vector<16x1xf32>
    %11 = math.log %10 : vector<16x1xf32>
    %12 = vector.broadcast %11 : vector<16x1xf32> to vector<16x128xf32>
    %13 = arith.subf %7, %12 : vector<16x128xf32>
    %c0_3 = arith.constant 0 : index
    %c0_4 = arith.constant 0 : index
    %14 = vector.load %arg3[%c0_3, %c0_4] : memref<16x128xf32, #tpu.memory_space<vmem>>, vector<16x128xf32>
    %c16_i32 = arith.constant 16 : i32
    %15 = arith.muli %arg0, %c16_i32 : i32
    %16 = tpu.iota {dimensions = array<i32: 0>} : vector<16x128xi32>
    %17 = vector.broadcast %15 : i32 to vector<16x128xi32>
    %18 = arith.addi %17, %16 : vector<16x128xi32>
    %cst_5 = arith.constant 0.000000e+00 : f32
    %19 = vector.broadcast %cst_5 : f32 to vector<16x128xf32>
    %20 = arith.cmpf ogt, %14, %19 : vector<16x128xf32>
    %c24_i32 = arith.constant 24 : i32
    %21 = vector.broadcast %c24_i32 : i32 to vector<16x128xi32>
    %22 = arith.cmpi slt, %18, %21 : vector<16x128xi32>
    %23 = arith.andi %20, %22 : vector<16x128xi1>
    %cst_6 = arith.constant 1.000000e+00 : f32
    %24 = vector.broadcast %cst_6 : f32 to vector<16x128xf32>
    %25 = arith.select %23, %14, %24 : vector<16x128xi1>, vector<16x128xf32>
    %26 = math.log %25 : vector<16x128xf32>
    %27 = arith.subf %26, %13 : vector<16x128xf32>
    %28 = arith.mulf %14, %27 : vector<16x128xf32>
    %cst_7 = arith.constant 0.000000e+00 : f32
    %29 = vector.broadcast %cst_7 : f32 to vector<16x128xf32>
    %30 = arith.select %23, %28, %29 : vector<16x128xi1>, vector<16x128xf32>
    %31 = vector.shape_cast %30 : vector<16x128xf32> to vector<2x8x128xf32>
    %cst_8 = arith.constant dense<0.000000e+00> : vector<8x128xf32>
    %32 = vector.multi_reduction <add>, %31, %cst_8 [0] : vector<2x8x128xf32> to vector<8x128xf32>
    %33 = vector.shape_cast %32 : vector<8x128xf32> to vector<1x8x128xf32>
    %c0_9 = arith.constant 0 : index
    %c0_10 = arith.constant 0 : index
    %c0_11 = arith.constant 0 : index
    %34 = vector.load %arg4[%c0_9, %c0_10, %c0_11] : memref<1x8x128xf32, #tpu.memory_space<vmem>>, vector<1x8x128xf32>
    tpu.vector_store %arg4[%c0_9, %c0_10, %c0_11], %33 {strides = array<i32>} : memref<1x8x128xf32, #tpu.memory_space<vmem>>, vector<1x8x128xf32>,
    return
  }
  func.func @transform_0(%arg0: i32) -> i32 {
    %c0_i32 = arith.constant 0 : i32
    %c0_i32_0 = arith.constant 0 : i32
    return %c0_i32 : i32
  }
  func.func @transform_1(%arg0: i32) -> (i32, i32) {
    %c0_i32 = arith.constant 0 : i32
    %c0_i32_0 = arith.constant 0 : i32
    return %arg0, %c0_i32 : i32, i32
  }
  func.func @transform_2(%arg0: i32) -> (i32, i32) {
    %c0_i32 = arith.constant 0 : i32
    %c0_i32_0 = arith.constant 0 : i32
    return %arg0, %c0_i32 : i32, i32
  }
  func.func @transform_3(%arg0: i32) -> (i32, i32, i32) {
    %c0_i32 = arith.constant 0 : i32
    %c0_i32_0 = arith.constant 0 : i32
    %c0_i32_1 = arith.constant 0 : i32
    return %arg0, %c0_i32, %c0_i32_0 : i32, i32, i32
  }
}

</mosaic_0001>

<bundles_post_ra>
// kernel: tpu_custom_call.1
= control target key start
LH: loop header
LB: loop body
LE: loop exit
PB: predicated region body
PF: predicated region fallthrough
CT: control target
= control target key end

     0   :  { %s869_s0 = inlined_call_operand.<no memory space> [shape: f32[1], index: 0, kind: input, shape index: {}]   ;;  %s870_s1 = inlined_call_operand.hbm [shape: f32[24,128], index: 1, kind: input, shape index: {}]   ;;  %s871_s2 = inlined_call_operand.hbm [shape: f32[24,128], index: 2, kind: input, shape index: {}]   ;;  %s872_s3 = inlined_call_operand.hbm [shape: f32[2,8,128], index: 3, kind: output, shape index: {}]  }
   0x1   :  { %8 = sst [smem:[#allocation2]] %s869_s0 }
   0x2   :  { %9 = vsyncpa [#allocation4], 0 }
   0x3   :  { %11 = vsyncpa [#allocation4 + $0x1], 0 }
   0x4   :  { %12 = vsyncpa [#allocation7], 0 }
   0x5   :  { %14 = vsyncpa [#allocation7 + $0x1], 0 }
   0x6   :  { %15 = vsyncpa [#allocation5], 0 }
   0x7   :  { %17 = vsyncpa [#allocation5 + $0x1], 0  ;;  %s651_s14 = smov 0   ;;  %s653_s15 = smov 0  }
   0x8   :  { %s655_s16 = smov 0   ;;  %s657_s17 = smov 0  }
   0x9 LB: > { %s672_s0 = sadd.s32 4294967295, %s619_s17   ;;  %s414_s18 = sadd.s32 4294967294, %s619_s17   ;;  %s619_s17 = sphi %s657_s17, %s889_s17   ;;  %s615_s16 = sphi %s655_s16, %s888_s16   ;;  %s611_s15 = sphi %s653_s15, %s887_s15   ;;  %s607_s14 = sphi %s651_s14, %s886_s14  }
   0xa   : > { %s676_s19 = sadd.s32 1, %s619_s17   ;;  %s51_s20 = sadd.s32 1, %s615_s16 }
   0xb   : > { %s48_s21 = ssub.s32 %s619_s17, %s676_s19  ;;  %p58_p0 = scmp.ne.s32.totalorder %s615_s16, %s611_s15 }
   0xc   : > { %p49_p1 = scmp.eq.s32.totalorder %s48_s21, 0  ;;  %p59_p2 = scmp.eq.s32.totalorder %s619_s17, 0 }
   0xd   : > { %p64_p3 = scmp.ne.s32.totalorder %s611_s15, %s607_s14  ;;  %p65_p4 = scmp.eq.s32.totalorder %s672_s0, 0 }
   0xe   : > { %s688_s22 = scalar_select %p49_p1, %s615_s16, %s51_s20  }
   0xf   : > { %p690_p5 = por %p59_p2, %p58_p0  ;;  %p694_p6 = por %p65_p4, %p64_p3 }
  0x10   : > { %p114_p7 = scmp.eq.s32.totalorder %s672_s0, 1  ;;  %p120_p8 = scmp.eq.s32.totalorder %s414_s18, 1 }
  0x11   : > { %p873_p11 = scmp.ge.s32.totalorder %s619_s17, 2 }
  0x12   : > { %p699_p9 = por %p114_p7, %p58_p0  ;;  %p703_p10 = por %p120_p8, %p64_p3 }
  0x13   : > { %139 = sbr.rel (%p873_p11) target bundleno = 88 (0x58), region = 20 }
  0x14   : > { %s877_s25 = scalar_select %p699_p9, 1, 0 }
  0x15   : > { %s878_s26 = scalar_select %p703_p10, 1, 0 }
  0x18   : > { %142 = sbr.rel (!%p690_p5) target bundleno = 56 (0x38), region = 24  ;;  %s143_s27 = sand.u32 (%p690_p5), 1, %s615_s16  }
  0x19   : > { %s418_s28 = sshll.u32 (%p690_p5), %s619_s17, 1  ;;  %s417_s29 = sshll.u32 (%p690_p5), %s143_s27, 4 }
  0x1a   : > { %s149_s30 = ssub.s32 (%p690_p5), 3, %s418_s28  ;;  %s717_s6 = scalar_lea.sflag (%p690_p5), [#allocation4], %s143_s27 }
  0x1b   : > { %p150_p12 = scmp.lt.s32.totalorder (%p690_p5), %s149_s30, 2  ;;  %s147_s7 = scalar_lea.vmem (%p690_p5), [#allocation3], %s417_s29 }
  0x1d   : > { %s891_s30 = smov (!%p150_p12, %s149_s30), 2 }
  0x1e   : > { %s714_s4 = sshll.u32 %s891_s30, 7 }
  0x1f   : > { %s154_s5 = ssub.s32 256, %s714_s4 }
  0x20   : > { %155 = vsyncadd %s717_s6, %s154_s5  ;;  %p420_p13 = scmp.ne.s32.totalorder %s714_s4, 0  ;;  %s440_s8 = sshll.u32 %s619_s17, 8 }
  0x21   : > { %s725_s11 = scalar_lea.hbm %s870_s1, %s440_s8  ;;  %s160_s12 = sshll.u32 %s147_s7, 4  ;;  %s727_s12 = int_to_ptr.vmem [resolvable:$true] %s160_s12 }
  0x22   : > { %s499_s13 = scalar_lea.hbm %s725_s11, %s714_s4  ;;  %s503_s21 = scalar_lea.hbm %s870_s1, 384 }
  0x23   : > { %p500_p0 = scmp.ne.s32.totalorder %s725_s11, %s499_s13  ;;  %p504_p3 = scmp.lt.s32.totalorder %s725_s11, %s870_s1 }
  0x24   : > { %p505_p4 = scmp.lt.s32.totalorder %s503_s21, %s499_s13 }
  0x25   : > { %p501_p1 = pnand %p500_p0, %p420_p13 }
  0x26   : > { %p506_p7 = por %p505_p4, %p504_p3 }
  0x27   : > { %p502_p2 = pneg %p501_p1 }
  0x29   : > { %p507_p8 = pnand %p506_p7, %p502_p2 }
  0x2b   : > { %510 = shalt.err (!%p507_p8)
}
  0x2c   : > { %s511_s29 = scalar_lea.vmem %s727_s12, %s714_s4  ;;  %s621_s30 = smov [#allocation3]  }
  0x2d   : > { %p512_p12 = scmp.ne.s32.totalorder %s727_s12, %s511_s29  ;;  %s515_s5 = sshll.u32 %s621_s30, 4  ;;  %s516_s5 = int_to_ptr.vmem [resolvable:$false] %s515_s5 }
  0x2e   : > { %s517_s7 = scalar_lea.vmem %s516_s5, 512  ;;  %p518_p11 = scmp.lt.s32.totalorder %s727_s12, %s516_s5 }
  0x2f   : > { %p513_p0 = pnand %p512_p12, %p420_p13  ;;  %p519_p10 = scmp.lt.s32.totalorder %s517_s7, %s511_s29 }
  0x31   : > { %p514_p1 = pneg %p513_p0  ;;  %p520_p9 = por %p519_p10, %p518_p11 }
  0x33   : > { %p521_p3 = pnand %p520_p9, %p514_p1 }
  0x35   : > { %524 = shalt.err (!%p521_p3)
}
  0x36   : > { %s622_s8 = smov 128   ;;  %s623_s9 = smov 8  }
  0x37   : > { %166 = dma.hbm_to_vmem [thread:$0]  (%p420_p13), %s725_s11, %s714_s4, %s727_s12, %s717_s6, %s622_s8, %s622_s8, %s623_s9  }
  0x38 PF: > { %169 = sbr.rel (!%p690_p5) target bundleno = 88 (0x58), region = 28  ;;  %s170_s10 = sand.u32 (%p690_p5), 1, %s615_s16  }
  0x39   : > { %s425_s13 = sshll.u32 (%p690_p5), %s619_s17, 1  ;;  %s424_s18 = sshll.u32 (%p690_p5), %s170_s10, 4 }
  0x3a   : > { %s176_s20 = ssub.s32 (%p690_p5), 3, %s425_s13  ;;  %s760_s28 = scalar_lea.sflag (%p690_p5), [#allocation7], %s170_s10 }
  0x3b   : > { %p177_p9 = scmp.lt.s32.totalorder (%p690_p5), %s176_s20, 2  ;;  %s174_s4 = scalar_lea.vmem (%p690_p5), [#allocation6], %s424_s18 }
  0x3d   : > { %s893_s20 = smov (!%p177_p9, %s176_s20), 2 }
  0x3e   : > { %s757_s21 = sshll.u32 %s893_s20, 7 }
  0x3f   : > { %s181_s27 = ssub.s32 256, %s757_s21 }
  0x40   : > { %182 = vsyncadd %s760_s28, %s181_s27  ;;  %p427_p5 = scmp.ne.s32.totalorder %s757_s21, 0  ;;  %s441_s23 = sshll.u32 %s619_s17, 8 }
  0x41   : > { %s768_s12 = scalar_lea.hbm %s871_s2, %s441_s23  ;;  %s187_s29 = sshll.u32 %s174_s4, 4  ;;  %s770_s29 = int_to_ptr.vmem [resolvable:$true] %s187_s29 }
  0x42   : > { %s525_s30 = scalar_lea.hbm %s768_s12, %s757_s21  ;;  %s529_s8 = scalar_lea.hbm %s871_s2, 384 }
  0x43   : > { %p526_p10 = scmp.ne.s32.totalorder %s768_s12, %s525_s30  ;;  %p530_p2 = scmp.lt.s32.totalorder %s768_s12, %s871_s2 }
  0x44   : > { %p531_p4 = scmp.lt.s32.totalorder %s529_s8, %s525_s30 }
  0x45   : > { %p527_p11 = pnand %p526_p10, %p427_p5 }
  0x46   : > { %p532_p7 = por %p531_p4, %p530_p2 }
  0x47   : > { %p528_p13 = pneg %p527_p11 }
  0x49   : > { %p533_p8 = pnand %p532_p7, %p528_p13 }
  0x4b   : > { %536 = shalt.err (!%p533_p8)
}
  0x4c   : > { %s537_s13 = scalar_lea.vmem %s770_s29, %s757_s21  ;;  %s624_s18 = smov [#allocation6]  }
  0x4d   : > { %p538_p12 = scmp.ne.s32.totalorder %s770_s29, %s537_s13  ;;  %s541_s20 = sshll.u32 %s624_s18, 4  ;;  %s542_s20 = int_to_ptr.vmem [resolvable:$false] %s541_s20 }
  0x4e   : > { %s543_s27 = scalar_lea.vmem %s542_s20, 512  ;;  %p544_p3 = scmp.lt.s32.totalorder %s770_s29, %s542_s20 }
  0x4f   : > { %p539_p0 = pnand %p538_p12, %p427_p5  ;;  %p545_p9 = scmp.lt.s32.totalorder %s543_s27, %s537_s13 }
  0x51   : > { %p540_p1 = pneg %p539_p0  ;;  %p546_p10 = por %p545_p9, %p544_p3 }
  0x53   : > { %p547_p11 = pnand %p546_p10, %p540_p1 }
  0x55   : > { %550 = shalt.err (!%p547_p11)
}
  0x56   : > { %s625_s4 = smov 128   ;;  %s626_s23 = smov 8  }
  0x57   : > { %193 = dma.hbm_to_vmem [thread:$0]  (%p427_p5), %s768_s12, %s757_s21, %s770_s29, %s760_s28, %s625_s4, %s625_s4, %s626_s23  }
  0x58 PF: > { %p431_p13 = scmp.ge.s32.totalorder %s619_s17, 1  ;;  %p195_p2 = scmp.lt.s32.totalorder %s619_s17, 3 }
  0x5a   : > { %p196_p4 = pnand %p431_p13, %p195_p2 }
  0x5b   : > { %s799_s6 = sand.u32 (!%p196_p4), 1, %s611_s15  }
  0x5c   : > { %199 = sbr.rel (%p196_p4) target bundleno = 445 (0x1bd), region = 32  ;;  %s432_s11 = sshll.u32 (!%p196_p4), %s799_s6, 4 }
  0x5d   : > { %s202_s30 = scalar_lea.sflag (!%p196_p4), [#allocation4], %s799_s6  ;;  %s205_s5 = scalar_lea.vmem (!%p196_p4), [#allocation3], %s432_s11 }
  0x61   : > { %594 = dma.done.wait (%p694_p6), %s202_s30, 256  }
  0x62   : > { %596 = vsyncadd (%p694_p6), %s202_s30, 4294967040  ;;  %s211_s21 = scalar_lea.sflag [#allocation7], %s799_s6  ;;  %s808_s28 = scalar_lea.vmem [#allocation6], %s432_s11 }
  0x63   : > { %598 = dma.done.wait (%p694_p6), %s211_s21, 256  }
  0x64   : > { %600 = vsyncadd (%p694_p6), %s211_s21, 4294967040  ;;  %s252_s12 = sld [smem:[#allocation2]]  ;;  %v253_v0 = vld [vmem:[%s205_s5] sm:$0xff]  ;;  %v254_v2 = vld [vmem:[%s205_s5 + $0x8] sm:$0xff]  ;;  %v281_v13 = vlaneseq  ;;  %s435_s24 = sshll.u32 %s672_s0, 4 }
  0x65   : > { %v284_v15 = vstv %s435_s24  ;;  %v278_v18 = vld [vmem:[%s808_s28] sm:$0xff]  ;;  %v279_v20 = vld [vmem:[%s808_s28 + $0x8] sm:$0xff]  ;;  %s434_s29 = sshll.u32 %s799_s6, 3  ;;  %s437_s7 = sshll.u32 %s672_s0, 7 }
  0x66   : > { %v282_v14 = vshrl.u32 %v281_v13, 7  ;;  %vm287_vm0 = vcmp.gt.f32.partialorder %v278_v18, 0.0  ;;  %vm288_vm3 = vcmp.gt.f32.partialorder %v279_v20, 0.0  ;;  %s241_s8 = scalar_lea.vmem [#allocation8], %s434_s29  ;;  %s319_s18 = scalar_lea.hbm %s872_s3, %s437_s7 }
  0x67   : > { %s321_s9 = sshll.u32 %s241_s8, 4  ;;  %s308_s20 = scalar_lea.sflag [#allocation5], %s799_s6  ;;  %s322_s9 = int_to_ptr.vmem [resolvable:$true] %s321_s9 }
  0x68   : > { %v285_v16 = vadd.s32 %v284_v15, %v282_v14  ;;  %v283_v17 = vadd.s32 8, %v282_v14  ;;  %s551_s27 = scalar_lea.vmem %s322_s9, 128  ;;  %p883_p5 = scmp.ne.s32.totalorder %s877_s25, 0 }
  0x69   : > { %p552_p6 = scmp.ne.s32.totalorder %s322_s9, %s551_s27  ;;  %s627_s0 = smov [#allocation8]  }
  0x6a   : > { %v255_v1 = vstv %s252_s12  ;;  %vm289_vm1 = vcmp.lt.s32.totalorder %v285_v16, 24  ;;  %v286_v19 = vadd.s32 %v284_v15, %v283_v17  ;;  %s555_s4 = sshll.u32 %s627_s0, 4  ;;  %s556_s4 = int_to_ptr.vmem [resolvable:$false] %s555_s4 }
  0x6b   : > { %v256_v3 = vmul.f32 %v255_v1, %v253_v0  ;;  %v257_v4 = vmul.f32 %v255_v1, %v254_v2  ;;  %vm817_vm2 = vmand %vm287_vm0, %vm289_vm1  ;;  %p553_p7 = pnand %p552_p6, %p883_p5  ;;  %s557_s23 = scalar_lea.vmem %s556_s4, 256 }
  0x6c   : > { %vm290_vm4 = vcmp.lt.s32.totalorder %v286_v19, 24  ;;  %v293_v22 = vsel %vm817_vm2, %v278_v18, 1.0  ;;  %p558_p12 = scmp.lt.s32.totalorder %s322_s9, %s556_s4  ;;  %p559_p0 = scmp.lt.s32.totalorder %s557_s23, %s551_s27 }
  0x6d   : > { %258 = vmax.xlane.f32.xlu0 %v256_v3  ;;  %vm823_vm5 = vmand %vm288_vm3, %vm290_vm4  ;;  %p554_p8 = pneg %p553_p7 }
  0x6e   : > { %v294_v25 = vsel %vm823_vm5, %v279_v20, 1.0  ;;  %p560_p1 = por %p559_p0, %p558_p12 }
  0x70   : > { %p561_p3 = pnand %p560_p1, %p554_p8 }
  0x71   : > { %260 = vmax.xlane.f32.xlu0 %v257_v4 }
  0xf6   : > { %v259_v5 = vpop.xlane.xlu0 %258 }
  0xf7   : > { %v262_v6 = vsub.f32 %v256_v3, %v259_v5 }
  0xf9   : > { %v264_v7 = vmul.f32 1.442695, %v262_v6 }
  0xfa   : > { %v261_v8 = vpop.xlane.xlu0 %260 }
  0xfb   : > { %v263_v9 = vsub.f32 %v257_v4, %v261_v8  ;;  %487 = vpow2.f32 %v264_v7 }
  0xfd   : > { %v266_v10 = vmul.f32 1.442695, %v263_v9 }
  0xff   : > { %489 = vpow2.f32 %v266_v10 }
 0x100   : > { %491 = vlog2.f32 %v293_v22 }
 0x108   : > { %v488_v11 = vpop.eup %487 }
 0x109   : > { %268 = vadd.xlane.f32.xlu1 %v488_v11 }
 0x10c   : > { %v490_v12 = vpop.eup %489 }
 0x10d   : > { %270 = vadd.xlane.f32.xlu1 %v490_v12  ;;  %v492_v27 = vpop.eup %491 }
 0x10e   : > { %v296_v29 = vmul.f32 0.6931472, %v492_v27 }
 0x192   : > { %v269_v24 = vpop.xlane.xlu1 %268 }
 0x193   : > { %493 = vlog2.f32 %v269_v24 }
 0x194   : > { %495 = vlog2.f32 %v294_v25 }
 0x196   : > { %v271_v26 = vpop.xlane.xlu1 %270 }
 0x197   : > { %497 = vlog2.f32 %v271_v26 }
 0x1a0   : > { %v494_v28 = vpop.eup %493 }
 0x1a1   : > { %v273_v30 = vmul.f32 0.6931472, %v494_v28  ;;  %v496_v31 = vpop.eup %495 }
 0x1a2   : > { %v298_v35 = vmul.f32 0.6931472, %v496_v31 }
 0x1a3   : > { %v276_v32 = vsub.f32 %v262_v6, %v273_v30 }
 0x1a4   : > { %v498_v33 = vpop.eup %497 }
 0x1a5   : > { %v299_v34 = vsub.f32 %v296_v29, %v276_v32  ;;  %v275_v36 = vmul.f32 0.6931472, %v498_v33 }
 0x1a7   : > { %v277_v37 = vsub.f32 %v263_v9, %v275_v36  ;;  %v301_v38 = vmul.f32 %v299_v34, %v278_v18 }
 0x1a9   : > { %v300_v39 = vsub.f32 %v298_v35, %v277_v37  ;;  %v303_v41 = vsel %vm817_vm2, %v301_v38, 0.0 }
 0x1ab   : > { %v302_v40 = vmul.f32 %v300_v39, %v279_v20 }
 0x1ad   : > { %v304_v42 = vsel %vm823_vm5, %v302_v40, 0.0 }
 0x1ae   : > { %v305_v43 = vadd.f32 %v304_v42, %v303_v41 }
 0x1b0   : > { %306 = vst [vmem:[%s241_s8] sm:$0xff] %v305_v43 }
 0x1b1   : > { %564 = shalt.err (!%p561_p3)
}
 0x1b2   : > { %s565_s11 = scalar_lea.hbm %s319_s18, 128  ;;  %s569_s5 = scalar_lea.hbm %s872_s3, 256 }
 0x1b3   : > { %p566_p9 = scmp.ne.s32.totalorder %s319_s18, %s565_s11  ;;  %p570_p13 = scmp.lt.s32.totalorder %s319_s18, %s872_s3 }
 0x1b4   : > { %p571_p2 = scmp.lt.s32.totalorder %s569_s5, %s565_s11 }
 0x1b5   : > { %p567_p10 = pnand %p566_p9, %p883_p5 }
 0x1b6   : > { %p572_p4 = por %p571_p2, %p570_p13 }
 0x1b7   : > { %p568_p11 = pneg %p567_p10 }
 0x1b9   : > { %p573_p6 = pnand %p572_p4, %p568_p11 }
 0x1bb   : > { %576 = shalt.err (!%p573_p6)
}
 0x1bc   : > { %444 = dma.vmem_to_hbm [thread:$0]  (%p883_p5), %s322_s9, 128, %s319_s18, %s308_s20  }
 0x1bd PF: > { %s333_s12 = sand.u32 1, %s607_s14   ;;  %p884_p7 = scmp.ne.s32.totalorder %s878_s26, 0 }
 0x1be   : > { %p885_p8 = scmp.ge.s32.totalorder %s619_s17, 2  ;;  %s334_s24 = scalar_lea.sflag [#allocation5], %s333_s12 }
 0x1c0   : > { %p447_p12 = pnand %p885_p8, %p884_p7 }
 0x1c2   : > { %p448_p0 = pneg %p447_p12 }
 0x1c4   : > { %602 = dma.done.wait (%p448_p0), %s334_s24, 128  }
 0x1c5   : > { %604 = vsyncadd (%p448_p0), %s334_s24, 4294967168  ;;  %p20_p1 = scmp.ge.s32.totalorder %s676_s19, 4   ;;  %s886_s14 = smov %s611_s15 }
 0x1c6   : > { %s887_s15 = smov %s615_s16  ;;  %s888_s16 = smov %s688_s22 }
 0x1c7   : > { %s889_s17 = smov %s676_s19  ;;  %22 = sbr.rel (!%p20_p1) target bundleno = 9 (0x9), region = 90 }
 0x1cc   :  { %339 = vsyncpa [#allocation4], 1 }
 0x1cd   :  { %341 = vsyncpa [#allocation4 + $0x1], 1 }
 0x1ce   :  { %342 = vsyncpa [#allocation7], 1 }
 0x1cf   :  { %344 = vsyncpa [#allocation7 + $0x1], 1 }
 0x1d0   :  { %345 = vsyncpa [#allocation5], 1 }
 0x1d1   :  { %347 = vsyncpa [#allocation5 + $0x1], 1 }

</bundles_post_ra>
